<compile_context>
chip_gen: v7x
topology: tpu7x:2x2x1
jax: 0.10.0
libtpu: 0.0.40
codegen_flags: <defaults>
</compile_context>

<pallas_src>
import functools

import jax
import jax.numpy as jnp
from jax.experimental import pallas as pl
from jax.experimental.pallas import tpu as pltpu

LANES = 128
VMEM_LIMIT = 32 * 1024 * 1024  # conservative scoped-VMEM budget (fits v5e/v6e/v7x)


def _round_up(x, m):
    return (x + m - 1) // m * m


# ----------------------------------------------------------------------------
# Kernel 1: fused conv3x3(same) + bias + ReLU over the whole image batch
# ----------------------------------------------------------------------------
def _conv3x3_relu_kernel(xcol_ref, w_ref, b_ref, o_ref):
    """All N images in one grid step; one K=9*C contraction per image.

    xcol_ref: [N, 9*C, H*W] bf16   per-image transposed im2col (taps stacked on K)
    w_ref   : [Cf, 9*C]     bf16   conv weight rows = out-channel, cols = (kh,kw,c)
    b_ref   : [Cf, 1]       f32
    o_ref   : [N, Cf, H*W]  bf16   per-image channel-major feature maps
    """
    n_img = xcol_ref.shape[0]
    w = w_ref[...]
    b = b_ref[...]
    # Static unroll over images inside ONE grid step: no per-image pipeline
    # overhead, each image is a single MXU dot with the full 9*C contraction
    # and an H*W-lane-wide output block.
    for n in range(n_img):
        acc = jnp.dot(w, xcol_ref[n], preferred_element_type=jnp.float32)  # [Cf, HW]
        o_ref[n] = jnp.maximum(acc + b, 0.0).astype(o_ref.dtype)


def conv3x3_relu_pallas(x_col, w_convT, b_conv_col):
    """x_col: [N, 9*C, H*W] bf16 -> feats3: [N, Cf, H*W] bf16."""
    N, K9C, HW = x_col.shape
    Cf = w_convT.shape[0]
    return pl.pallas_call(
        _conv3x3_relu_kernel,
        out_shape=jax.ShapeDtypeStruct((N, Cf, HW), jnp.bfloat16),
        grid=(1,),
        in_specs=[
            pl.BlockSpec((N, K9C, HW), lambda i: (0, 0, 0)),
            pl.BlockSpec((Cf, K9C), lambda i: (0, 0)),
            pl.BlockSpec((Cf, 1), lambda i: (0, 0)),
        ],
        out_specs=pl.BlockSpec((N, Cf, HW), lambda i: (0, 0, 0)),
        compiler_params=pltpu.CompilerParams(
            dimension_semantics=("arbitrary",),
            vmem_limit_bytes=VMEM_LIMIT),
    )(x_col, w_convT, b_conv_col)


# ----------------------------------------------------------------------------
# Kernel 2: fused classifier + fc2 + relu + fc4 + sigmoid + deferral combine
#   comb  = feats @ [w_cls | w_fc2] + [b_cls | b_fc2]        (one MXU pass)
#   s     = sigmoid(fc4(relu(comb[orig rows, fc2 half])))
#   out   = (1 - s) * comb[orig rows, cls half] + s * mean_over_augs(cls half)
# ----------------------------------------------------------------------------
def _defer_head_kernel(f_ref, w_ref, b_ref, w4_ref, b4_ref, o_ref,
                       *, A, B, Np, orig_idx):
    # f_ref : [N, K]      bf16   per-image flattened features, N = A*B rows
    # w_ref : [K, 2*Np]   bf16   [classifier | fc2] weights, 128-lane padded
    # b_ref : [1, 2*Np]   f32    [classifier | fc2] biases
    # w4_ref: [1, Np]     f32    fc4 weight (row vector, padded)
    # b4_ref: [1, 1]      f32
    # o_ref : [B, Np]     f32
    comb = jnp.dot(f_ref[...], w_ref[...],
                   preferred_element_type=jnp.float32) + b_ref[...]   # [N, 2*Np]

    # Classifier logits per augmentation: first Np lanes (128-aligned slice).
    rows = [comb[a * B:(a + 1) * B, :Np] for a in range(A)]            # A x [B, Np]
    orig_pred = rows[orig_idx]
    aug_mean = sum(rows) * (1.0 / A)

    # Deferral gate from the original image's features: fc2 -> relu -> fc4 -> sigmoid.
    h_orig = jnp.maximum(comb[orig_idx * B:(orig_idx + 1) * B, Np:], 0.0)  # [B, Np]
    presig = jnp.sum(h_orig * w4_ref[...], axis=-1, keepdims=True) + b4_ref[...]
    s = jax.nn.sigmoid(presig)                                             # [B, 1]

    o_ref[...] = (1.0 - s) * orig_pred + s * aug_mean


def defer_head_pallas(feats, w_comb, b_comb, w_fc4t, b_fc4, *, A, B, orig_idx):
    N, K = feats.shape
    Np2 = w_comb.shape[1]
    Np = Np2 // 2
    return pl.pallas_call(
        functools.partial(_defer_head_kernel, A=A, B=B, Np=Np, orig_idx=orig_idx),
        out_shape=jax.ShapeDtypeStruct((B, Np), jnp.float32),
        grid=(1,),
        in_specs=[
            pl.BlockSpec((N, K), lambda i: (0, 0)),
            pl.BlockSpec((K, Np2), lambda i: (0, 0)),
            pl.BlockSpec((1, Np2), lambda i: (0, 0)),
            pl.BlockSpec((1, Np), lambda i: (0, 0)),
            pl.BlockSpec((1, 1), lambda i: (0, 0)),
        ],
        out_specs=pl.BlockSpec((B, Np), lambda i: (0, 0)),
        compiler_params=pltpu.CompilerParams(
            dimension_semantics=("arbitrary",),
            vmem_limit_bytes=VMEM_LIMIT),
    )(feats, w_comb, b_comb, w_fc4t, b_fc4)


# ----------------------------------------------------------------------------
# Parameter init (synthetic backbone + deferral head), 128-lane padded heads
# ----------------------------------------------------------------------------
def xavier_uniform(key, fan_in, fan_out, shape):
    bound = jnp.sqrt(6.0 / (fan_in + fan_out))
    return jax.random.uniform(key, shape, jnp.float32, -bound, bound)


def init_params(key, C_in, C_feat, H, W, n_classes):
    n_features = C_feat * H * W
    Np = _round_up(n_classes, LANES)          # 128-lane padded head width
    k = jax.random.split(key, 8)

    # Backbone features: conv3x3 weights (PyTorch [Cf, C, 3, 3]) flattened to
    # [Cf, (kh, kw, c)] = [Cf, 9*C] to match the im2col tap/channel order.
    w_conv_t = xavier_uniform(k[0], C_in * 9, C_feat * 9, (C_feat, C_in, 3, 3))
    w_convT = jnp.transpose(w_conv_t, (0, 2, 3, 1)).reshape(C_feat, 9 * C_in)
    b_conv_col = 0.01 * jax.random.normal(k[1], (C_feat, 1))

    def pad_cols(m, n_out):
        return jnp.pad(m, ((0, 0), (0, Np - n_out)))

    # Feature order produced by the conv kernel is (c, h, w) == PyTorch flatten
    # order, so classifier / fc2 weights need no row permutation.
    w_cls = pad_cols(xavier_uniform(k[2], n_features, n_classes,
                                    (n_features, n_classes)), n_classes)
    b_cls = pad_cols(0.01 * jax.random.normal(k[3], (1, n_classes)), n_classes)
    w_fc2 = pad_cols(xavier_uniform(k[4], n_features, n_classes,
                                    (n_features, n_classes)), n_classes)
    b_fc2 = pad_cols(0.01 * jax.random.normal(k[5], (1, n_classes)), n_classes)
    w_fc4 = xavier_uniform(k[6], n_classes, 1, (n_classes, 1))
    w_fc4t = pad_cols(w_fc4.T, n_classes)                         # [1, Np]
    b_fc4 = 0.01 * jax.random.normal(k[7], (1, 1))

    # One combined [K, 2*Np] weight so classifier + fc2 share a single MXU pass.
    w_comb = jnp.concatenate([w_cls, w_fc2], axis=1).astype(jnp.bfloat16)
    b_comb = jnp.concatenate([b_cls, b_fc2], axis=1)

    return {
        # bf16 MXU operands (f32 accumulation in-kernel), f32 biases / VPU data.
        "w_convT": w_convT.astype(jnp.bfloat16),
        "b_conv_col": b_conv_col.astype(jnp.float32),
        "w_comb": w_comb, "b_comb": b_comb,
        "w_fc4t": w_fc4t.astype(jnp.float32),
        "b_fc4": b_fc4.astype(jnp.float32),
    }


# ----------------------------------------------------------------------------
# ImageDeferral.forward
# ----------------------------------------------------------------------------
@functools.partial(jax.jit, static_argnames=("orig_idx", "n_classes"))
def image_deferral_forward(x, params, *, orig_idx, n_classes):
    # x: [n_aug, B, C, H, W] float32 (PyTorch-style NCHW per augmentation)
    A, B, C, H, W = x.shape
    N = A * B
    HW = H * W

    # Build the tap-concatenated, per-image transposed im2col slab once, in
    # bf16 (single cast).  The 3x3 taps become one K = 9*C contraction inside
    # the conv kernel; only a 1-px zero halo + 9 shifted slices of the (tiny)
    # raw input are done in XLA.
    xp = jnp.pad(x.reshape(N, C, H, W), ((0, 0), (0, 0), (1, 1), (1, 1)))
    taps = [xp[:, :, kh:kh + H, kw:kw + W] for kh in range(3) for kw in range(3)]
    x_col = (jnp.concatenate(taps, axis=1)
             .reshape(N, 9 * C, HW).astype(jnp.bfloat16))          # [N, 9C, HW]

    # model.features(x[i]) for all augmentations at once (fused conv+ReLU).
    feats3 = conv3x3_relu_pallas(x_col, params["w_convT"],
                                 params["b_conv_col"])             # [N, Cf, HW]
    # Trailing-dim merge only (free, no transpose); (c, h, w) == PyTorch flatten.
    feats = feats3.reshape(N, feats3.shape[1] * HW)                # [N, K]

    # Fused: classifier for every augmentation + fc2/relu/fc4/sigmoid gate on
    # the original augmentation + deferral combine, all from the same feats
    # tile resident in VMEM.
    out_pad = defer_head_pallas(feats, params["w_comb"], params["b_comb"],
                                params["w_fc4t"], params["b_fc4"],
                                A=A, B=B, orig_idx=orig_idx)
    return out_pad[:, :n_classes]     # drop the 128-lane head padding


# ----------------------------------------------------------------------------
if __name__ == "__main__":
    n_aug, B, C, H, W = 4, 2, 3, 8, 8
    C_feat, n_classes, orig_idx = 8, 16, 0

    key = jax.random.PRNGKey(0)
    kx, kp = jax.random.split(key)
    x = jax.random.normal(kx, (n_aug, B, C, H, W), jnp.float32)
    params = init_params(kp, C, C_feat, H, W, n_classes)

    out = image_deferral_forward(x, params, orig_idx=orig_idx, n_classes=n_classes)
    out = jax.block_until_ready(out)
    assert out.shape == (B, n_classes) and out.dtype == jnp.float32
    print("KERNEL_OK")
</pallas_src>

<mosaic_0001>
module attributes {stable_mosaic.version = 11 : i64} {
  func.func @_defer_head_kernel(%arg0: i32, %arg1: memref<8x512xbf16, #tpu.memory_space<vmem>>, %arg2: memref<512x256xbf16, #tpu.memory_space<vmem>>, %arg3: memref<1x256xf32, #tpu.memory_space<vmem>>, %arg4: memref<1x128xf32, #tpu.memory_space<vmem>>, %arg5: memref<1x1xf32, #tpu.memory_space<vmem>>, %arg6: memref<2x128xf32, #tpu.memory_space<vmem>>) attributes {dimension_semantics = [#tpu.dimension_semantics<arbitrary>], iteration_bounds = array<i64: 1>, scalar_prefetch = 0 : i64, scratch_operands = 0 : i64, tpu.core_type = #tpu.core_type<tc>, window_params = [{pipeline_mode = #tpu.pipeline_mode<synchronous>, transform_indices = @transform_0, window_bounds = array<i64: 8, 512>}, {pipeline_mode = #tpu.pipeline_mode<synchronous>, transform_indices = @transform_1, window_bounds = array<i64: 512, 256>}, {pipeline_mode = #tpu.pipeline_mode<synchronous>, transform_indices = @transform_2, window_bounds = array<i64: 1, 256>}, {pipeline_mode = #tpu.pipeline_mode<synchronous>, transform_indices = @transform_3, window_bounds = array<i64: 1, 128>}, {pipeline_mode = #tpu.pipeline_mode<synchronous>, transform_indices = @transform_4, window_bounds = array<i64: 1, 1>}, {pipeline_mode = #tpu.pipeline_mode<synchronous>, transform_indices = @transform_5, window_bounds = array<i64: 2, 128>}]} {
    %c0 = arith.constant 0 : index
    %c0_0 = arith.constant 0 : index
    %0 = vector.load %arg1[%c0, %c0_0] : memref<8x512xbf16, #tpu.memory_space<vmem>>, vector<8x512xbf16>
    %c0_1 = arith.constant 0 : index
    %c0_2 = arith.constant 0 : index
    %1 = vector.load %arg2[%c0_1, %c0_2] : memref<512x256xbf16, #tpu.memory_space<vmem>>, vector<512x256xbf16>
    %cst = arith.constant dense<0.000000e+00> : vector<8x256xf32>
    %2 = tpu.matmul %0, %1, %cst {dimension_numbers = #tpu.dot_dimension_numbers<[1], [0], [0], [1], [0, 0, 1, 1], [], []>} : vector<8x512xbf16>, vector<512x256xbf16>, vector<8x256xf32> -> vector<8x256xf32>
    %c0_3 = arith.constant 0 : index
    %c0_4 = arith.constant 0 : index
    %3 = vector.load %arg3[%c0_3, %c0_4] : memref<1x256xf32, #tpu.memory_space<vmem>>, vector<1x256xf32>
    %4 = vector.broadcast %3 : vector<1x256xf32> to vector<8x256xf32>
    %5 = arith.addf %2, %4 : vector<8x256xf32>
    %6 = vector.extract_strided_slice %5 {offsets = [0, 0], sizes = [2, 128], strides = [1, 1]} : vector<8x256xf32> to vector<2x128xf32>
    %7 = vector.extract_strided_slice %5 {offsets = [2, 0], sizes = [2, 128], strides = [1, 1]} : vector<8x256xf32> to vector<2x128xf32>
    %8 = vector.extract_strided_slice %5 {offsets = [4, 0], sizes = [2, 128], strides = [1, 1]} : vector<8x256xf32> to vector<2x128xf32>
    %9 = vector.extract_strided_slice %5 {offsets = [6, 0], sizes = [2, 128], strides = [1, 1]} : vector<8x256xf32> to vector<2x128xf32>
    %cst_5 = arith.constant 0.000000e+00 : f32
    %10 = vector.broadcast %cst_5 : f32 to vector<2x128xf32>
    %11 = arith.addf %10, %6 : vector<2x128xf32>
    %12 = arith.addf %11, %7 : vector<2x128xf32>
    %13 = arith.addf %12, %8 : vector<2x128xf32>
    %14 = arith.addf %13, %9 : vector<2x128xf32>
    %cst_6 = arith.constant 2.500000e-01 : f32
    %15 = vector.broadcast %cst_6 : f32 to vector<2x128xf32>
    %16 = arith.mulf %14, %15 : vector<2x128xf32>
    %17 = vector.extract_strided_slice %5 {offsets = [0, 128], sizes = [2, 128], strides = [1, 1]} : vector<8x256xf32> to vector<2x128xf32>
    %cst_7 = arith.constant 0.000000e+00 : f32
    %18 = vector.broadcast %cst_7 : f32 to vector<2x128xf32>
    %19 = arith.maximumf %17, %18 : vector<2x128xf32>
    %c0_8 = arith.constant 0 : index
    %c0_9 = arith.constant 0 : index
    %20 = vector.load %arg4[%c0_8, %c0_9] : memref<1x128xf32, #tpu.memory_space<vmem>>, vector<1x128xf32>
    %21 = vector.broadcast %20 : vector<1x128xf32> to vector<2x128xf32>
    %22 = arith.mulf %19, %21 : vector<2x128xf32>
    %cst_10 = arith.constant dense<0.000000e+00> : vector<2xf32>
    %23 = vector.multi_reduction <add>, %22, %cst_10 [1] : vector<2x128xf32> to vector<2xf32>
    %24 = vector.shape_cast %23 : vector<2xf32> to vector<2x1xf32>
    %c0_11 = arith.constant 0 : index
    %c0_12 = arith.constant 0 : index
    %25 = vector.load %arg5[%c0_11, %c0_12] : memref<1x1xf32, #tpu.memory_space<vmem>>, vector<1x1xf32>
    %26 = vector.broadcast %25 : vector<1x1xf32> to vector<2x1xf32>
    %27 = arith.addf %24, %26 : vector<2x1xf32>
    %28 = arith.negf %27 : vector<2x1xf32>
    %29 = math.exp %28 : vector<2x1xf32>
    %cst_13 = arith.constant 1.000000e+00 : f32
    %30 = vector.broadcast %cst_13 : f32 to vector<2x1xf32>
    %31 = arith.addf %30, %29 : vector<2x1xf32>
    %32 = arith.divf %30, %31 : vector<2x1xf32>
    %cst_14 = arith.constant 1.000000e+00 : f32
    %33 = vector.broadcast %cst_14 : f32 to vector<2x1xf32>
    %34 = arith.subf %33, %32 : vector<2x1xf32>
    %35 = vector.broadcast %34 : vector<2x1xf32> to vector<2x128xf32>
    %36 = arith.mulf %35, %6 : vector<2x128xf32>
    %37 = vector.broadcast %32 : vector<2x1xf32> to vector<2x128xf32>
    %38 = arith.mulf %37, %16 : vector<2x128xf32>
    %39 = arith.addf %36, %38 : vector<2x128xf32>
    %c0_15 = arith.constant 0 : index
    %c0_16 = arith.constant 0 : index
    %40 = vector.load %arg6[%c0_15, %c0_16] : memref<2x128xf32, #tpu.memory_space<vmem>>, vector<2x128xf32>
    tpu.vector_store %arg6[%c0_15, %c0_16], %39 {strides = array<i32>} : memref<2x128xf32, #tpu.memory_space<vmem>>, vector<2x128xf32>,
    return
  }
  func.func @transform_0(%arg0: i32) -> (i32, i32) {
    %c0_i32 = arith.constant 0 : i32
    %c0_i32_0 = arith.constant 0 : i32
    %c0_i32_1 = arith.constant 0 : i32
    return %c0_i32, %c0_i32_0 : i32, i32
  }
  func.func @transform_1(%arg0: i32) -> (i32, i32) {
    %c0_i32 = arith.constant 0 : i32
    %c0_i32_0 = arith.constant 0 : i32
    %c0_i32_1 = arith.constant 0 : i32
    return %c0_i32, %c0_i32_0 : i32, i32
  }
  func.func @transform_2(%arg0: i32) -> (i32, i32) {
    %c0_i32 = arith.constant 0 : i32
    %c0_i32_0 = arith.constant 0 : i32
    %c0_i32_1 = arith.constant 0 : i32
    return %c0_i32, %c0_i32_0 : i32, i32
  }
  func.func @transform_3(%arg0: i32) -> (i32, i32) {
    %c0_i32 = arith.constant 0 : i32
    %c0_i32_0 = arith.constant 0 : i32
    %c0_i32_1 = arith.constant 0 : i32
    return %c0_i32, %c0_i32_0 : i32, i32
  }
  func.func @transform_4(%arg0: i32) -> (i32, i32) {
    %c0_i32 = arith.constant 0 : i32
    %c0_i32_0 = arith.constant 0 : i32
    %c0_i32_1 = arith.constant 0 : i32
    return %c0_i32, %c0_i32_0 : i32, i32
  }
  func.func @transform_5(%arg0: i32) -> (i32, i32) {
    %c0_i32 = arith.constant 0 : i32
    %c0_i32_0 = arith.constant 0 : i32
    %c0_i32_1 = arith.constant 0 : i32
    return %c0_i32, %c0_i32_0 : i32, i32
  }
}

module attributes {stable_mosaic.version = 11 : i64} {
  func.func @_conv3x3_relu_kernel(%arg0: i32, %arg1: memref<8x27x64xbf16, #tpu.memory_space<vmem>>, %arg2: memref<8x27xbf16, #tpu.memory_space<vmem>>, %arg3: memref<8x1xf32, #tpu.memory_space<vmem>>, %arg4: memref<8x8x64xbf16, #tpu.memory_space<vmem>>) attributes {dimension_semantics = [#tpu.dimension_semantics<arbitrary>], iteration_bounds = array<i64: 1>, scalar_prefetch = 0 : i64, scratch_operands = 0 : i64, tpu.core_type = #tpu.core_type<tc>, window_params = [{pipeline_mode = #tpu.pipeline_mode<synchronous>, transform_indices = @transform_0, window_bounds = array<i64: 8, 27, 64>}, {pipeline_mode = #tpu.pipeline_mode<synchronous>, transform_indices = @transform_1, window_bounds = array<i64: 8, 27>}, {pipeline_mode = #tpu.pipeline_mode<synchronous>, transform_indices = @transform_2, window_bounds = array<i64: 8, 1>}, {pipeline_mode = #tpu.pipeline_mode<synchronous>, transform_indices = @transform_3, window_bounds = array<i64: 8, 8, 64>}]} {
    %c0 = arith.constant 0 : index
    %c0_0 = arith.constant 0 : index
    %0 = vector.load %arg2[%c0, %c0_0] : memref<8x27xbf16, #tpu.memory_space<vmem>>, vector<8x27xbf16>
    %c0_1 = arith.constant 0 : index
    %c0_2 = arith.constant 0 : index
    %1 = vector.load %arg3[%c0_1, %c0_2] : memref<8x1xf32, #tpu.memory_space<vmem>>, vector<8x1xf32>
    %c0_3 = arith.constant 0 : index
    %c0_4 = arith.constant 0 : index
    %c0_5 = arith.constant 0 : index
    %2 = vector.load %arg1[%c0_3, %c0_4, %c0_5] : memref<8x27x64xbf16, #tpu.memory_space<vmem>>, vector<1x27x64xbf16>
    %3 = vector.shape_cast %2 : vector<1x27x64xbf16> to vector<27x64xbf16>
    %cst = arith.constant dense<0.000000e+00> : vector<8x64xf32>
    %4 = tpu.matmul %0, %3, %cst {dimension_numbers = #tpu.dot_dimension_numbers<[1], [0], [0], [1], [0, 0, 1, 1], [], []>} : vector<8x27xbf16>, vector<27x64xbf16>, vector<8x64xf32> -> vector<8x64xf32>
    %5 = vector.broadcast %1 : vector<8x1xf32> to vector<8x64xf32>
    %6 = arith.addf %4, %5 : vector<8x64xf32>
    %cst_6 = arith.constant 0.000000e+00 : f32
    %7 = vector.broadcast %cst_6 : f32 to vector<8x64xf32>
    %8 = arith.maximumf %6, %7 : vector<8x64xf32>
    %9 = arith.truncf %8 : vector<8x64xf32> to vector<8x64xbf16>
    %c0_7 = arith.constant 0 : index
    %c0_8 = arith.constant 0 : index
    %c0_9 = arith.constant 0 : index
    %10 = vector.load %arg4[%c0_7, %c0_8, %c0_9] : memref<8x8x64xbf16, #tpu.memory_space<vmem>>, vector<1x8x64xbf16>
    %11 = vector.shape_cast %10 : vector<1x8x64xbf16> to vector<8x64xbf16>
    %12 = vector.shape_cast %9 : vector<8x64xbf16> to vector<1x8x64xbf16>
    tpu.vector_store %arg4[%c0_7, %c0_8, %c0_9], %12 {strides = array<i32>} : memref<8x8x64xbf16, #tpu.memory_space<vmem>>, vector<1x8x64xbf16>,
    %c1 = arith.constant 1 : index
    %c0_10 = arith.constant 0 : index
    %c0_11 = arith.constant 0 : index
    %13 = vector.load %arg1[%c1, %c0_10, %c0_11] : memref<8x27x64xbf16, #tpu.memory_space<vmem>>, vector<1x27x64xbf16>
    %14 = vector.shape_cast %13 : vector<1x27x64xbf16> to vector<27x64xbf16>
    %cst_12 = arith.constant dense<0.000000e+00> : vector<8x64xf32>
    %15 = tpu.matmul %0, %14, %cst_12 {dimension_numbers = #tpu.dot_dimension_numbers<[1], [0], [0], [1], [0, 0, 1, 1], [], []>} : vector<8x27xbf16>, vector<27x64xbf16>, vector<8x64xf32> -> vector<8x64xf32>
    %16 = vector.broadcast %1 : vector<8x1xf32> to vector<8x64xf32>
    %17 = arith.addf %15, %16 : vector<8x64xf32>
    %cst_13 = arith.constant 0.000000e+00 : f32
    %18 = vector.broadcast %cst_13 : f32 to vector<8x64xf32>
    %19 = arith.maximumf %17, %18 : vector<8x64xf32>
    %20 = arith.truncf %19 : vector<8x64xf32> to vector<8x64xbf16>
    %c1_14 = arith.constant 1 : index
    %c0_15 = arith.constant 0 : index
    %c0_16 = arith.constant 0 : index
    %21 = vector.load %arg4[%c1_14, %c0_15, %c0_16] : memref<8x8x64xbf16, #tpu.memory_space<vmem>>, vector<1x8x64xbf16>
    %22 = vector.shape_cast %21 : vector<1x8x64xbf16> to vector<8x64xbf16>
    %23 = vector.shape_cast %20 : vector<8x64xbf16> to vector<1x8x64xbf16>
    tpu.vector_store %arg4[%c1_14, %c0_15, %c0_16], %23 {strides = array<i32>} : memref<8x8x64xbf16, #tpu.memory_space<vmem>>, vector<1x8x64xbf16>,
    %c2 = arith.constant 2 : index
    %c0_17 = arith.constant 0 : index
    %c0_18 = arith.constant 0 : index
    %24 = vector.load %arg1[%c2, %c0_17, %c0_18] : memref<8x27x64xbf16, #tpu.memory_space<vmem>>, vector<1x27x64xbf16>
    %25 = vector.shape_cast %24 : vector<1x27x64xbf16> to vector<27x64xbf16>
    %cst_19 = arith.constant dense<0.000000e+00> : vector<8x64xf32>
    %26 = tpu.matmul %0, %25, %cst_19 {dimension_numbers = #tpu.dot_dimension_numbers<[1], [0], [0], [1], [0, 0, 1, 1], [], []>} : vector<8x27xbf16>, vector<27x64xbf16>, vector<8x64xf32> -> vector<8x64xf32>
    %27 = vector.broadcast %1 : vector<8x1xf32> to vector<8x64xf32>
    %28 = arith.addf %26, %27 : vector<8x64xf32>
    %cst_20 = arith.constant 0.000000e+00 : f32
    %29 = vector.broadcast %cst_20 : f32 to vector<8x64xf32>
    %30 = arith.maximumf %28, %29 : vector<8x64xf32>
    %31 = arith.truncf %30 : vector<8x64xf32> to vector<8x64xbf16>
    %c2_21 = arith.constant 2 : index
    %c0_22 = arith.constant 0 : index
    %c0_23 = arith.constant 0 : index
    %32 = vector.load %arg4[%c2_21, %c0_22, %c0_23] : memref<8x8x64xbf16, #tpu.memory_space<vmem>>, vector<1x8x64xbf16>
    %33 = vector.shape_cast %32 : vector<1x8x64xbf16> to vector<8x64xbf16>
    %34 = vector.shape_cast %31 : vector<8x64xbf16> to vector<1x8x64xbf16>
    tpu.vector_store %arg4[%c2_21, %c0_22, %c0_23], %34 {strides = array<i32>} : memref<8x8x64xbf16, #tpu.memory_space<vmem>>, vector<1x8x64xbf16>,
    %c3 = arith.constant 3 : index
    %c0_24 = arith.constant 0 : index
    %c0_25 = arith.constant 0 : index
    %35 = vector.load %arg1[%c3, %c0_24, %c0_25] : memref<8x27x64xbf16, #tpu.memory_space<vmem>>, vector<1x27x64xbf16>
    %36 = vector.shape_cast %35 : vector<1x27x64xbf16> to vector<27x64xbf16>
    %cst_26 = arith.constant dense<0.000000e+00> : vector<8x64xf32>
    %37 = tpu.matmul %0, %36, %cst_26 {dimension_numbers = #tpu.dot_dimension_numbers<[1], [0], [0], [1], [0, 0, 1, 1], [], []>} : vector<8x27xbf16>, vector<27x64xbf16>, vector<8x64xf32> -> vector<8x64xf32>
    %38 = vector.broadcast %1 : vector<8x1xf32> to vector<8x64xf32>
    %39 = arith.addf %37, %38 : vector<8x64xf32>
    %cst_27 = arith.constant 0.000000e+00 : f32
    %40 = vector.broadcast %cst_27 : f32 to vector<8x64xf32>
    %41 = arith.maximumf %39, %40 : vector<8x64xf32>
    %42 = arith.truncf %41 : vector<8x64xf32> to vector<8x64xbf16>
    %c3_28 = arith.constant 3 : index
    %c0_29 = arith.constant 0 : index
    %c0_30 = arith.constant 0 : index
    %43 = vector.load %arg4[%c3_28, %c0_29, %c0_30] : memref<8x8x64xbf16, #tpu.memory_space<vmem>>, vector<1x8x64xbf16>
    %44 = vector.shape_cast %43 : vector<1x8x64xbf16> to vector<8x64xbf16>
    %45 = vector.shape_cast %42 : vector<8x64xbf16> to vector<1x8x64xbf16>
    tpu.vector_store %arg4[%c3_28, %c0_29, %c0_30], %45 {strides = array<i32>} : memref<8x8x64xbf16, #tpu.memory_space<vmem>>, vector<1x8x64xbf16>,
    %c4 = arith.constant 4 : index
    %c0_31 = arith.constant 0 : index
    %c0_32 = arith.constant 0 : index
    %46 = vector.load %arg1[%c4, %c0_31, %c0_32] : memref<8x27x64xbf16, #tpu.memory_space<vmem>>, vector<1x27x64xbf16>
    %47 = vector.shape_cast %46 : vector<1x27x64xbf16> to vector<27x64xbf16>
    %cst_33 = arith.constant dense<0.000000e+00> : vector<8x64xf32>
    %48 = tpu.matmul %0, %47, %cst_33 {dimension_numbers = #tpu.dot_dimension_numbers<[1], [0], [0], [1], [0, 0, 1, 1], [], []>} : vector<8x27xbf16>, vector<27x64xbf16>, vector<8x64xf32> -> vector<8x64xf32>
    %49 = vector.broadcast %1 : vector<8x1xf32> to vector<8x64xf32>
    %50 = arith.addf %48, %49 : vector<8x64xf32>
    %cst_34 = arith.constant 0.000000e+00 : f32
    %51 = vector.broadcast %cst_34 : f32 to vector<8x64xf32>
    %52 = arith.maximumf %50, %51 : vector<8x64xf32>
    %53 = arith.truncf %52 : vector<8x64xf32> to vector<8x64xbf16>
    %c4_35 = arith.constant 4 : index
    %c0_36 = arith.constant 0 : index
    %c0_37 = arith.constant 0 : index
    %54 = vector.load %arg4[%c4_35, %c0_36, %c0_37] : memref<8x8x64xbf16, #tpu.memory_space<vmem>>, vector<1x8x64xbf16>
    %55 = vector.shape_cast %54 : vector<1x8x64xbf16> to vector<8x64xbf16>
    %56 = vector.shape_cast %53 : vector<8x64xbf16> to vector<1x8x64xbf16>
    tpu.vector_store %arg4[%c4_35, %c0_36, %c0_37], %56 {strides = array<i32>} : memref<8x8x64xbf16, #tpu.memory_space<vmem>>, vector<1x8x64xbf16>,
    %c5 = arith.constant 5 : index
    %c0_38 = arith.constant 0 : index
    %c0_39 = arith.constant 0 : index
    %57 = vector.load %arg1[%c5, %c0_38, %c0_39] : memref<8x27x64xbf16, #tpu.memory_space<vmem>>, vector<1x27x64xbf16>
    %58 = vector.shape_cast %57 : vector<1x27x64xbf16> to vector<27x64xbf16>
    %cst_40 = arith.constant dense<0.000000e+00> : vector<8x64xf32>
    %59 = tpu.matmul %0, %58, %cst_40 {dimension_numbers = #tpu.dot_dimension_numbers<[1], [0], [0], [1], [0, 0, 1, 1], [], []>} : vector<8x27xbf16>, vector<27x64xbf16>, vector<8x64xf32> -> vector<8x64xf32>
    %60 = vector.broadcast %1 : vector<8x1xf32> to vector<8x64xf32>
    %61 = arith.addf %59, %60 : vector<8x64xf32>
    %cst_41 = arith.constant 0.000000e+00 : f32
    %62 = vector.broadcast %cst_41 : f32 to vector<8x64xf32>
    %63 = arith.maximumf %61, %62 : vector<8x64xf32>
    %64 = arith.truncf %63 : vector<8x64xf32> to vector<8x64xbf16>
    %c5_42 = arith.constant 5 : index
    %c0_43 = arith.constant 0 : index
    %c0_44 = arith.constant 0 : index
    %65 = vector.load %arg4[%c5_42, %c0_43, %c0_44] : memref<8x8x64xbf16, #tpu.memory_space<vmem>>, vector<1x8x64xbf16>
    %66 = vector.shape_cast %65 : vector<1x8x64xbf16> to vector<8x64xbf16>
    %67 = vector.shape_cast %64 : vector<8x64xbf16> to vector<1x8x64xbf16>
    tpu.vector_store %arg4[%c5_42, %c0_43, %c0_44], %67 {strides = array<i32>} : memref<8x8x64xbf16, #tpu.memory_space<vmem>>, vector<1x8x64xbf16>,
    %c6 = arith.constant 6 : index
    %c0_45 = arith.constant 0 : index
    %c0_46 = arith.constant 0 : index
    %68 = vector.load %arg1[%c6, %c0_45, %c0_46] : memref<8x27x64xbf16, #tpu.memory_space<vmem>>, vector<1x27x64xbf16>
    %69 = vector.shape_cast %68 : vector<1x27x64xbf16> to vector<27x64xbf16>
    %cst_47 = arith.constant dense<0.000000e+00> : vector<8x64xf32>
    %70 = tpu.matmul %0, %69, %cst_47 {dimension_numbers = #tpu.dot_dimension_numbers<[1], [0], [0], [1], [0, 0, 1, 1], [], []>} : vector<8x27xbf16>, vector<27x64xbf16>, vector<8x64xf32> -> vector<8x64xf32>
    %71 = vector.broadcast %1 : vector<8x1xf32> to vector<8x64xf32>
    %72 = arith.addf %70, %71 : vector<8x64xf32>
    %cst_48 = arith.constant 0.000000e+00 : f32
    %73 = vector.broadcast %cst_48 : f32 to vector<8x64xf32>
    %74 = arith.maximumf %72, %73 : vector<8x64xf32>
    %75 = arith.truncf %74 : vector<8x64xf32> to vector<8x64xbf16>
    %c6_49 = arith.constant 6 : index
    %c0_50 = arith.constant 0 : index
    %c0_51 = arith.constant 0 : index
    %76 = vector.load %arg4[%c6_49, %c0_50, %c0_51] : memref<8x8x64xbf16, #tpu.memory_space<vmem>>, vector<1x8x64xbf16>
    %77 = vector.shape_cast %76 : vector<1x8x64xbf16> to vector<8x64xbf16>
    %78 = vector.shape_cast %75 : vector<8x64xbf16> to vector<1x8x64xbf16>
    tpu.vector_store %arg4[%c6_49, %c0_50, %c0_51], %78 {strides = array<i32>} : memref<8x8x64xbf16, #tpu.memory_space<vmem>>, vector<1x8x64xbf16>,
    %c7 = arith.constant 7 : index
    %c0_52 = arith.constant 0 : index
    %c0_53 = arith.constant 0 : index
    %79 = vector.load %arg1[%c7, %c0_52, %c0_53] : memref<8x27x64xbf16, #tpu.memory_space<vmem>>, vector<1x27x64xbf16>
    %80 = vector.shape_cast %79 : vector<1x27x64xbf16> to vector<27x64xbf16>
    %cst_54 = arith.constant dense<0.000000e+00> : vector<8x64xf32>
    %81 = tpu.matmul %0, %80, %cst_54 {dimension_numbers = #tpu.dot_dimension_numbers<[1], [0], [0], [1], [0, 0, 1, 1], [], []>} : vector<8x27xbf16>, vector<27x64xbf16>, vector<8x64xf32> -> vector<8x64xf32>
    %82 = vector.broadcast %1 : vector<8x1xf32> to vector<8x64xf32>
    %83 = arith.addf %81, %82 : vector<8x64xf32>
    %cst_55 = arith.constant 0.000000e+00 : f32
    %84 = vector.broadcast %cst_55 : f32 to vector<8x64xf32>
    %85 = arith.maximumf %83, %84 : vector<8x64xf32>
    %86 = arith.truncf %85 : vector<8x64xf32> to vector<8x64xbf16>
    %c7_56 = arith.constant 7 : index
    %c0_57 = arith.constant 0 : index
    %c0_58 = arith.constant 0 : index
    %87 = vector.load %arg4[%c7_56, %c0_57, %c0_58] : memref<8x8x64xbf16, #tpu.memory_space<vmem>>, vector<1x8x64xbf16>
    %88 = vector.shape_cast %87 : vector<1x8x64xbf16> to vector<8x64xbf16>
    %89 = vector.shape_cast %86 : vector<8x64xbf16> to vector<1x8x64xbf16>
    tpu.vector_store %arg4[%c7_56, %c0_57, %c0_58], %89 {strides = array<i32>} : memref<8x8x64xbf16, #tpu.memory_space<vmem>>, vector<1x8x64xbf16>,
    return
  }
  func.func @transform_0(%arg0: i32) -> (i32, i32, i32) {
    %c0_i32 = arith.constant 0 : i32
    %c0_i32_0 = arith.constant 0 : i32
    %c0_i32_1 = arith.constant 0 : i32
    %c0_i32_2 = arith.constant 0 : i32
    return %c0_i32, %c0_i32_0, %c0_i32_1 : i32, i32, i32
  }
  func.func @transform_1(%arg0: i32) -> (i32, i32) {
    %c0_i32 = arith.constant 0 : i32
    %c0_i32_0 = arith.constant 0 : i32
    %c0_i32_1 = arith.constant 0 : i32
    return %c0_i32, %c0_i32_0 : i32, i32
  }
  func.func @transform_2(%arg0: i32) -> (i32, i32) {
    %c0_i32 = arith.constant 0 : i32
    %c0_i32_0 = arith.constant 0 : i32
    %c0_i32_1 = arith.constant 0 : i32
    return %c0_i32, %c0_i32_0 : i32, i32
  }
  func.func @transform_3(%arg0: i32) -> (i32, i32, i32) {
    %c0_i32 = arith.constant 0 : i32
    %c0_i32_0 = arith.constant 0 : i32
    %c0_i32_1 = arith.constant 0 : i32
    %c0_i32_2 = arith.constant 0 : i32
    return %c0_i32, %c0_i32_0, %c0_i32_1 : i32, i32, i32
  }
}

</mosaic_0001>

<bundles_post_ra>
// kernel: image_deferral_forward.3
= control target key start
LH: loop header
LB: loop body
LE: loop exit
PB: predicated region body
PF: predicated region fallthrough
CT: control target
= control target key end

     0   :  { %s1043_s0 = inlined_call_operand.vmem [shape: bf16[8,512], index: 0, kind: input, shape index: {}]   ;;  %s1044_s1 = inlined_call_operand.vmem [shape: bf16[512,256], index: 1, kind: input, shape index: {}]   ;;  %s1045_s2 = inlined_call_operand.vmem [shape: f32[1,256], index: 2, kind: input, shape index: {}]   ;;  %s1046_s3 = inlined_call_operand.vmem [shape: f32[1,128], index: 3, kind: input, shape index: {}]   ;;  %s1047_s4 = inlined_call_operand.<no memory space> [shape: f32[1,1], index: 4, kind: input, shape index: {}]   ;;  %s1048_s5 = inlined_call_operand.hbm [shape: f32[2,128], index: 5, kind: output, shape index: {}]  }
   0x1   :  { %v10_v0 = vstv %s1047_s4 }
   0x2   :  { %11 = vst [vmem:[#allocation2] sm:$0x1] %v10_v0 }
   0x3   :  { %v664_v1 = vld [vmem:[%s1044_s1 + $0x4] ss:$8 sps:$4 sm:$0xff]   ;;  %v668_v3 = vld [vmem:[%s1044_s1] ss:$8 sps:$4 sm:$0xff]   ;;  %v670_v5 = vld [vmem:[%s1044_s1 + $0x14] ss:$8 sps:$4 sm:$0xff]  }
   0x4   :  { %v666_v2 = vld [vmem:[%s1044_s1 + $0x104] ss:$8 sps:$4 sm:$0xff]   ;;  %435 = vmatprep.subr.bf16.mxu1 %v664_v1  ;;  %v669_v4 = vld [vmem:[%s1044_s1 + $0x100] ss:$8 sps:$4 sm:$0xff]   ;;  %v672_v6 = vld [vmem:[%s1044_s1 + $0x114] ss:$8 sps:$4 sm:$0xff]  }
   0x5   :  { %476 = vmatprep.subr.bf16.mxu0 %v666_v2  ;;  %436 = vmatpush1.bf16.msra.mxu1 %v668_v3  ;;  %v674_v7 = vld [vmem:[%s1044_s1 + $0x10] ss:$8 sps:$4 sm:$0xff]   ;;  %v676_v9 = vld [vmem:[%s1044_s1 + $0x24] ss:$8 sps:$4 sm:$0xff]   ;;  %v680_v11 = vld [vmem:[%s1044_s1 + $0x20] ss:$8 sps:$4 sm:$0xff]  }
   0x6   :  { %477 = vmatpush1.bf16.msra.mxu0 %v669_v4  ;;  %437 = vmatprep.subr.bf16.mxu1 %v670_v5  ;;  %v675_v8 = vld [vmem:[%s1044_s1 + $0x110] ss:$8 sps:$4 sm:$0xff]   ;;  %v678_v10 = vld [vmem:[%s1044_s1 + $0x124] ss:$8 sps:$4 sm:$0xff]   ;;  %v681_v12 = vld [vmem:[%s1044_s1 + $0x120] ss:$8 sps:$4 sm:$0xff]  }
   0x7   :  { %478 = vmatprep.subr.bf16.mxu0 %v672_v6  ;;  %v682_v13 = vld [vmem:[%s1044_s1 + $0x34] ss:$8 sps:$4 sm:$0xff]   ;;  %v686_v15 = vld [vmem:[%s1044_s1 + $0x30] ss:$8 sps:$4 sm:$0xff]   ;;  %v688_v17 = vld [vmem:[%s1044_s1 + $0x44] ss:$8 sps:$4 sm:$0xff]  }
   0x8   :  { %v684_v14 = vld [vmem:[%s1044_s1 + $0x134] ss:$8 sps:$4 sm:$0xff]   ;;  %v687_v16 = vld [vmem:[%s1044_s1 + $0x130] ss:$8 sps:$4 sm:$0xff]   ;;  %v690_v18 = vld [vmem:[%s1044_s1 + $0x144] ss:$8 sps:$4 sm:$0xff]  }
   0x9   :  { %438 = vmatpush1.bf16.msra.mxu1 %v674_v7  ;;  %v692_v19 = vld [vmem:[%s1044_s1 + $0x40] ss:$8 sps:$4 sm:$0xff]   ;;  %v694_v21 = vld [vmem:[%s1044_s1 + $0x54] ss:$8 sps:$4 sm:$0xff]   ;;  %v698_v23 = vld [vmem:[%s1044_s1 + $0x50] ss:$8 sps:$4 sm:$0xff]  }
   0xa   :  { %479 = vmatpush1.bf16.msra.mxu0 %v675_v8  ;;  %439 = vmatprep.subr.bf16.mxu1 %v676_v9  ;;  %v693_v20 = vld [vmem:[%s1044_s1 + $0x140] ss:$8 sps:$4 sm:$0xff]   ;;  %v696_v22 = vld [vmem:[%s1044_s1 + $0x154] ss:$8 sps:$4 sm:$0xff]   ;;  %v699_v24 = vld [vmem:[%s1044_s1 + $0x150] ss:$8 sps:$4 sm:$0xff]  }
   0xb   :  { %480 = vmatprep.subr.bf16.mxu0 %v678_v10  ;;  %v700_v25 = vld [vmem:[%s1044_s1 + $0x64] ss:$8 sps:$4 sm:$0xff]   ;;  %v704_v27 = vld [vmem:[%s1044_s1 + $0x60] ss:$8 sps:$4 sm:$0xff]   ;;  %v706_v29 = vld [vmem:[%s1044_s1 + $0x74] ss:$8 sps:$4 sm:$0xff]  }
   0xc   :  { %v702_v26 = vld [vmem:[%s1044_s1 + $0x164] ss:$8 sps:$4 sm:$0xff]   ;;  %v705_v28 = vld [vmem:[%s1044_s1 + $0x160] ss:$8 sps:$4 sm:$0xff]   ;;  %v708_v30 = vld [vmem:[%s1044_s1 + $0x174] ss:$8 sps:$4 sm:$0xff]  }
   0xd   :  { %440 = vmatpush1.bf16.msra.mxu1 %v680_v11  ;;  %v710_v31 = vld [vmem:[%s1044_s1 + $0x70] ss:$8 sps:$4 sm:$0xff]   ;;  %v712_v33 = vld [vmem:[%s1044_s1 + $0x84] ss:$8 sps:$4 sm:$0xff]   ;;  %v716_v35 = vld [vmem:[%s1044_s1 + $0x80] ss:$8 sps:$4 sm:$0xff]  }
   0xe   :  { %481 = vmatpush1.bf16.msra.mxu0 %v681_v12  ;;  %441 = vmatprep.subr.bf16.mxu1 %v682_v13  ;;  %v711_v32 = vld [vmem:[%s1044_s1 + $0x170] ss:$8 sps:$4 sm:$0xff]   ;;  %v714_v34 = vld [vmem:[%s1044_s1 + $0x184] ss:$8 sps:$4 sm:$0xff]   ;;  %v717_v36 = vld [vmem:[%s1044_s1 + $0x180] ss:$8 sps:$4 sm:$0xff]  }
   0xf   :  { %482 = vmatprep.subr.bf16.mxu0 %v684_v14  ;;  %v718_v37 = vld [vmem:[%s1044_s1 + $0x94] ss:$8 sps:$4 sm:$0xff]   ;;  %v722_v39 = vld [vmem:[%s1044_s1 + $0x90] ss:$8 sps:$4 sm:$0xff]   ;;  %v724_v41 = vld [vmem:[%s1044_s1 + $0xa4] ss:$8 sps:$4 sm:$0xff]  }
  0x10   :  { %v720_v38 = vld [vmem:[%s1044_s1 + $0x194] ss:$8 sps:$4 sm:$0xff]   ;;  %v723_v40 = vld [vmem:[%s1044_s1 + $0x190] ss:$8 sps:$4 sm:$0xff]   ;;  %v726_v42 = vld [vmem:[%s1044_s1 + $0x1a4] ss:$8 sps:$4 sm:$0xff]  }
  0x11   :  { %442 = vmatpush1.bf16.msra.mxu1 %v686_v15  ;;  %v728_v43 = vld [vmem:[%s1044_s1 + $0xa0] ss:$8 sps:$4 sm:$0xff]   ;;  %v730_v45 = vld [vmem:[%s1044_s1 + $0xb4] ss:$8 sps:$4 sm:$0xff]  }
  0x12   :  { %483 = vmatpush1.bf16.msra.mxu0 %v687_v16  ;;  %443 = vmatprep.subr.bf16.mxu1 %v688_v17  ;;  %v729_v44 = vld [vmem:[%s1044_s1 + $0x1a0] ss:$8 sps:$4 sm:$0xff]   ;;  %v732_v46 = vld [vmem:[%s1044_s1 + $0x1b4] ss:$8 sps:$4 sm:$0xff]  }
  0x13   :  { %484 = vmatprep.subr.bf16.mxu0 %v690_v18  ;;  %v23_v47 = vld [vmem:[%s1043_s0] sm:$0xff]  ;;  %v24_v49 = vld [vmem:[%s1043_s0 + $0x8] sm:$0xff] }
  0x14   :  { %v586_v48 = vcombine.high %v23_v47, %v23_v47 }
  0x15   :  { %444 = vmatpush1.bf16.msra.mxu1 %v692_v19 }
  0x16   :  { %485 = vmatpush1.bf16.msra.mxu0 %v693_v20  ;;  %445 = vmatprep.subr.bf16.mxu1 %v694_v21 }
  0x17   :  { %486 = vmatprep.subr.bf16.mxu0 %v696_v22 }
  0x19   :  { %446 = vmatpush1.bf16.msra.mxu1 %v698_v23 }
  0x1a   :  { %487 = vmatpush1.bf16.msra.mxu0 %v699_v24  ;;  %447 = vmatprep.subr.bf16.mxu1 %v700_v25 }
  0x1b   :  { %488 = vmatprep.subr.bf16.mxu0 %v702_v26 }
  0x1d   :  { %448 = vmatpush1.bf16.msra.mxu1 %v704_v27 }
  0x1e   :  { %489 = vmatpush1.bf16.msra.mxu0 %v705_v28  ;;  %449 = vmatprep.subr.bf16.mxu1 %v706_v29 }
  0x1f   :  { %490 = vmatprep.subr.bf16.mxu0 %v708_v30 }
  0x21   :  { %450 = vmatpush1.bf16.msra.mxu1 %v710_v31 }
  0x22   :  { %491 = vmatpush1.bf16.msra.mxu0 %v711_v32  ;;  %451 = vmatprep.subr.bf16.mxu1 %v712_v33 }
  0x23   :  { %492 = vmatprep.subr.bf16.mxu0 %v714_v34 }
  0x25   :  { %452 = vmatpush1.bf16.msra.mxu1 %v716_v35 }
  0x26   :  { %493 = vmatpush1.bf16.msra.mxu0 %v717_v36  ;;  %453 = vmatprep.subr.bf16.mxu1 %v718_v37 }
  0x27   :  { %494 = vmatprep.subr.bf16.mxu0 %v720_v38 }
  0x29   :  { %454 = vmatpush1.bf16.msra.mxu1 %v722_v39 }
  0x2a   :  { %495 = vmatpush1.bf16.msra.mxu0 %v723_v40  ;;  %455 = vmatprep.subr.bf16.mxu1 %v724_v41 }
  0x2b   :  { %496 = vmatprep.subr.bf16.mxu0 %v726_v42 }
  0x2c   :  { %12 = vsyncpa [#allocation4], 0  ;;  %v734_v50 = vld [vmem:[%s1044_s1 + $0xb0] ss:$8 sps:$4 sm:$0xff]   ;;  %v588_v52 = vcombine.high %v24_v49, %v24_v49  ;;  %v736_v53 = vld [vmem:[%s1044_s1 + $0xc4] ss:$8 sps:$4 sm:$0xff]   ;;  %467 = vmatprep.mubr.bf16.mxu1 %v586_v48  ;;  %v585_v5 = vcombine.low %v23_v47, %v23_v47  ;;  %v587_v6 = vcombine.low %v24_v49, %v24_v49  ;;  %v91_v7 = vlaneseq }
  0x2d   :  { %456 = vmatpush1.bf16.msra.mxu1 %v728_v43  ;;  %v735_v51 = vld [vmem:[%s1044_s1 + $0x1b0] ss:$8 sps:$4 sm:$0xff]   ;;  %v738_v54 = vld [vmem:[%s1044_s1 + $0x1c4] ss:$8 sps:$4 sm:$0xff]   ;;  %v740_v55 = vld [vmem:[%s1044_s1 + $0xc0] ss:$8 sps:$4 sm:$0xff]  }
  0x2e   :  { %497 = vmatpush1.bf16.msra.mxu0 %v729_v44  ;;  %457 = vmatprep.subr.bf16.mxu1 %v730_v45  ;;  %v741_v56 = vld [vmem:[%s1044_s1 + $0x1c0] ss:$8 sps:$4 sm:$0xff]   ;;  %v742_v57 = vld [vmem:[%s1044_s1 + $0xd4] ss:$8 sps:$4 sm:$0xff]   ;;  %v746_v59 = vld [vmem:[%s1044_s1 + $0xd0] ss:$8 sps:$4 sm:$0xff]  }
  0x2f   :  { %498 = vmatprep.subr.bf16.mxu0 %v732_v46  ;;  %508 = vmatprep.mubr.bf16.mxu0 %v588_v52  ;;  %v744_v58 = vld [vmem:[%s1044_s1 + $0x1d4] ss:$8 sps:$4 sm:$0xff]   ;;  %v747_v60 = vld [vmem:[%s1044_s1 + $0x1d0] ss:$8 sps:$4 sm:$0xff]   ;;  %v748_v61 = vld [vmem:[%s1044_s1 + $0xe4] ss:$8 sps:$4 sm:$0xff]  }
  0x30   :  { %v750_v62 = vld [vmem:[%s1044_s1 + $0x1e4] ss:$8 sps:$4 sm:$0xff]   ;;  %v752_v63 = vld [vmem:[%s1044_s1 + $0xe0] ss:$8 sps:$4 sm:$0xff]   ;;  %v754_v1 = vld [vmem:[%s1044_s1 + $0xf4] ss:$8 sps:$4 sm:$0xff]  }
  0x31   :  { %458 = vmatpush1.bf16.msra.mxu1 %v734_v50  ;;  %v753_v0 = vld [vmem:[%s1044_s1 + $0x1e0] ss:$8 sps:$4 sm:$0xff]   ;;  %v756_v2 = vld [vmem:[%s1044_s1 + $0x1f4] ss:$8 sps:$4 sm:$0xff]   ;;  %v758_v3 = vld [vmem:[%s1044_s1 + $0xf0] ss:$8 sps:$4 sm:$0xff]  }
  0x32   :  { %499 = vmatpush1.bf16.msra.mxu0 %v735_v51  ;;  %459 = vmatprep.subr.bf16.mxu1 %v736_v53  ;;  %v759_v4 = vld [vmem:[%s1044_s1 + $0x1f0] ss:$8 sps:$4 sm:$0xff]   ;;  %v92_v8 = vshrl.u32 %v91_v7, 7  ;;  %v89_v10 = vld [vmem:[%s1045_s2] sm:$0x3]  ;;  %vm538_vm0 = vcmask 1041408  }
  0x33   :  { %500 = vmatprep.subr.bf16.mxu0 %v738_v54  ;;  %v653_v26 = vld [vmem:[%s1046_s3] ss:$0 sm:$0xff]  ;;  %v792_v30 = vmov 0   ;;  %s793_s2 = smov [#allocation3]  }
  0x34   :  { %v93_v9 = vsub.s32 0, %v92_v8  ;;  %v97_v11 = vsub.s32 1, %v92_v8  ;;  %663 = vset.pattern.permute.xlu1 %v792_v30  ;;  %662 = vset.pattern.permute.xlu0 %v792_v30  ;;  %v654_v31 = vld [vmem:[#allocation2] ss:$0 sm:$0xff]  ;;  %s577_s3 = sshll.u32 %s793_s2, 4  ;;  %s578_s3 = int_to_ptr.vmem [resolvable:$true] %s577_s3 }
  0x35   :  { %460 = vmatpush1.bf16.msra.mxu1 %v740_v55  ;;  %s768_s23 = scalar_lea.vmem %s578_s3, 32  ;;  %p773_p1 = scmp.lt.s32.totalorder %s578_s3, %s578_s3 }
  0x36   :  { %501 = vmatpush1.bf16.msra.mxu0 %v741_v56  ;;  %461 = vmatprep.subr.bf16.mxu1 %v742_v57  ;;  %v94_v12 = vrot.slane %v89_v10, %v93_v9  ;;  %v98_v13 = vrot.slane %v89_v10, %v97_v11  ;;  %p769_p0 = scmp.ne.s32.totalorder %s578_s3, %s768_s23  ;;  %p774_p2 = scmp.lt.s32.totalorder %s768_s23, %s768_s23 }
  0x37   :  { %502 = vmatprep.subr.bf16.mxu0 %v744_v58 }
  0x38   :  { %p775_p3 = por %p774_p2, %p773_p1 }
  0x39   :  { %462 = vmatpush1.bf16.msra.mxu1 %v746_v59 }
  0x3a   :  { %503 = vmatpush1.bf16.msra.mxu0 %v747_v60  ;;  %463 = vmatprep.subr.bf16.mxu1 %v748_v61  ;;  %p776_p4 = pnand %p775_p3, %p769_p0 }
  0x3b   :  { %504 = vmatprep.subr.bf16.mxu0 %v750_v62 }
  0x3d   :  { %464 = vmatpush1.bf16.msra.mxu1 %v752_v63 }
  0x3e   :  { %505 = vmatpush1.bf16.msra.mxu0 %v753_v0  ;;  %465 = vmatprep.subr.bf16.mxu1 %v754_v1 }
  0x3f   :  { %506 = vmatprep.subr.bf16.mxu0 %v756_v2 }
  0x41   :  { %466 = vmatpush1.bf16.msra.mxu1 %v758_v3 }
  0x42   :  { %507 = vmatpush1.bf16.msra.mxu0 %v759_v4 }
  0x44   :  { %468 = vmatmul.mubr.bf16.vlgmr.msra.gmra.mrb[0].mxu1 %v585_v5 }
  0x45   :  { %509 = vmatmul.mubr.bf16.vlgmr.msra.gmra.mrb[0].mxu0 %v587_v6 }
 0x117   :  { %v469_v14 = vpop.f32.mrb[0].mxu1 }
 0x118   :  { %v510_v15 = vpop.f32.mrb[0].mxu0  ;;  %v470_v16 = vadd.f32 %v469_v14, %v94_v12  ;;  %v471_v17 = vpop.f32.mrb[1].mxu1 }
 0x119   :  { %v512_v18 = vpop.f32.mrb[1].mxu0  ;;  %v472_v19 = vadd.f32 %v471_v17, %v98_v13  ;;  %v473_v20 = vpop.f32.mrb[2].mxu1 }
 0x11a   :  { %v514_v21 = vpop.f32.mrb[2].mxu0  ;;  %v511_v22 = vadd.f32 %v510_v15, %v470_v16  ;;  %v474_v23 = vpop.f32.mrb[3].mxu1 }
 0x11b   :  { %v515_v24 = vpop.f32.mrb[3].mxu0  ;;  %v513_v25 = vadd.f32 %v512_v18, %v472_v19 }
 0x11c   :  { %v519_v39 = vrot.slane %v511_v22, 2  ;;  %v522_v41 = vrot.slane %v511_v22, 4  ;;  %v525_v43 = vrot.slane %v511_v22, 6 }
 0x11d   :  { %v529_v27 = vmax.f32 %v513_v25, 0.0 }
 0x11e   :  { %v521_v40 = vadd.f32 %v519_v39, %v511_v22 }
 0x11f   :  { %v537_v28 = vmul.f32 %v653_v26, %v529_v27 }
 0x120   :  { %v524_v42 = vadd.f32 %v522_v41, %v521_v40 }
 0x121   :  { %v539_v29 = vsel %vm538_vm0, %v537_v28, 0.0 }
 0x122   :  { %540 = vadd.xlane.f32.xlu0 %v539_v29  ;;  %v527_v44 = vadd.f32 %v525_v43, %v524_v42 }
 0x124   :  { %v528_v46 = vmul.f32 0.25, %v527_v44 }
 0x1af   :  { %v541_v32 = vpop.xlane.xlu0 %540 }
 0x1b0   :  { %v549_v33 = vadd.f32 %v654_v31, %v541_v32 }
 0x1b2   :  { %v655_v34 = vmul.f32 -1.442695, %v549_v33 }
 0x1b4   :  { %764 = vpow2.f32 %v655_v34 }
 0x1be   :  { %v765_v35 = vpop.eup %764 }
 0x1bf   :  { %v553_v36 = vadd.f32 1.0, %v765_v35 }
 0x1c1   :  { %766 = vrcp.f32 %v553_v36 }
 0x1cb   :  { %v767_v37 = vpop.eup %766 }
 0x1cc   :  { %565 = vperm.xlu1 %663, %v767_v37   ;;  %v556_v38 = vsub.f32 1.0, %v767_v37 }
 0x1ce   :  { %559 = vperm.xlu0 %662, %v556_v38  }
 0x24b   :  { %v566_v45 = vpop.permute.xlu1 %565 }
 0x24c   :  { %v568_v48 = vmul.f32 %v566_v45, %v528_v46 }
 0x24d   :  { %v560_v47 = vpop.permute.xlu0 %559 }
 0x24e   :  { %v562_v49 = vmul.f32 %v560_v47, %v511_v22 }
 0x250   :  { %v569_v50 = vadd.f32 %v568_v48, %v562_v49 }
 0x252   :  { %570 = vst [vmem:[#allocation3] sm:$0x3] %v569_v50 }
 0x253   :  { %779 = shalt.err (!%p776_p4)
}
 0x254   :  { %s780_s26 = scalar_lea.hbm %s1048_s5, 32 }
 0x255   :  { %p781_p5 = scmp.ne.s32.totalorder %s1048_s5, %s780_s26  ;;  %p784_p6 = scmp.lt.u32.totalorder %s780_s26, %s1048_s5 }
 0x257   :  { %p786_p7 = pnand %p784_p6, %p781_p5 }
 0x259   :  { %789 = shalt.err (!%p786_p7)
}
 0x25a   :  { %580 = dma.vmem_to_hbm [thread:$0]  %s578_s3, 32, %s1048_s5, [#allocation4]  }
 0x25b   :  { %790 = dma.done.wait [#allocation4], 32  }
 0x25c   :  { %791 = vsyncadd [#allocation4], 4294967264 }
 0x25d   :  { %584 = vsyncpa [#allocation4], 1 }

// kernel: image_deferral_forward.2
= control target key start
LH: loop header
LB: loop body
LE: loop exit
PB: predicated region body
PF: predicated region fallthrough
CT: control target
= control target key end

     0   :  { %vm41_vm0 = vcmask 1044480   ;;  %vm42_vm1 = vcmask 1045504   ;;  %v705_v0 = vmov 0.0   ;;  %v706_v2 = vmov 65535   ;;  %s875_s0 = inlined_call_operand.vmem [shape: bf16[8,27,64], index: 0, kind: input, shape index: {}]   ;;  %s876_s1 = inlined_call_operand.vmem [shape: bf16[8,27], index: 1, kind: input, shape index: {}]   ;;  %s877_s2 = inlined_call_operand.vmem [shape: f32[8,1], index: 2, kind: input, shape index: {}]   ;;  %s878_s3 = inlined_call_operand.vmem [shape: bf16[8,8,64], index: 3, kind: output, shape index: {}]  }
   0x1   :  { %620 = vmatprep.subr.bf16.mxu0 %v705_v0  ;;  %628 = vmatprep.subr.bf16.mxu1 %v705_v0  ;;  %v689_v1 = vld [vmem:[%s875_s0] sm:$0xff]   ;;  %v43_v3 = vsel %vm41_vm0, 4294967295, %v706_v2  ;;  %v690_v4 = vld [vmem:[%s875_s0 + $0x10] sm:$0xff]   ;;  %v691_v6 = vld [vmem:[%s875_s0 + $0x8] sm:$0x3f]   ;;  %vm707_vm2 = vmmov 0  }
   0x2   :  { %v737_v5 = vsel %vm42_vm1, %v43_v3, 0  ;;  %621 = vmatpush3.bf16.msra.mxu0 %v689_v1  ;;  %629 = vmatpush3.bf16.msra.mxu1 %v690_v4  ;;  %v692_v7 = vld [vmem:[%s875_s0 + $0x18] sm:$0x3f]   ;;  %v751_v9 = vld [vmem:[%s876_s1] sm:$0xf]  ;;  %vm37_vm3 = vcmask 220160  }
   0x3   :  { %622 = vmatprep.subr.bf16.mxu0 %v705_v0  ;;  %630 = vmatprep.subr.bf16.mxu1 %v705_v0  ;;  %v46_v8 = vand.u32 %v691_v6, %v737_v5  ;;  %v109_v10 = vand.u32 %v692_v7, %v737_v5  ;;  %v693_v11 = vld [vmem:[%s875_s0 + $0x20] sm:$0xff]   ;;  %v694_v12 = vld [vmem:[%s875_s0 + $0x30] sm:$0xff]   ;;  %v708_v13 = vmov 0   ;;  %v695_v14 = vld [vmem:[%s875_s0 + $0x28] sm:$0x3f]   ;;  %vm90_vm4 = vcmask 519168  }
   0x4   :  { %624 = vmatprep.mubr.msk.bf16.mxu0 %vm707_vm2, %v705_v0  ;;  %632 = vmatprep.mubr.msk.bf16.mxu1 %vm707_vm2, %v705_v0  ;;  %v696_v15 = vld [vmem:[%s875_s0 + $0x38] sm:$0x3f]   ;;  %v172_v16 = vand.u32 %v695_v14, %v737_v5  ;;  %v697_v18 = vld [vmem:[%s875_s0 + $0x40] sm:$0xff]   ;;  %v698_v19 = vld [vmem:[%s875_s0 + $0x50] sm:$0xff]  }
   0x5   :  { %688 = vset.pattern.permute.xlu0 %v708_v13  ;;  %v235_v17 = vand.u32 %v696_v15, %v737_v5  ;;  %v699_v20 = vld [vmem:[%s875_s0 + $0x48] sm:$0x3f]   ;;  %v700_v21 = vld [vmem:[%s875_s0 + $0x58] sm:$0x3f]   ;;  %v16_v22 = vld [vmem:[%s877_s2] sm:$0xff] }
   0x6   :  { %623 = vmatpush3.bf16.msra.mxu0 %v46_v8  ;;  %631 = vmatpush3.bf16.msra.mxu1 %v109_v10  ;;  %v298_v23 = vand.u32 %v699_v20, %v737_v5  ;;  %v361_v24 = vand.u32 %v700_v21, %v737_v5  ;;  %v701_v25 = vld [vmem:[%s875_s0 + $0x60] sm:$0xff]   ;;  %v703_v26 = vld [vmem:[%s875_s0 + $0x68] sm:$0x3f]   ;;  %v702_v27 = vld [vmem:[%s875_s0 + $0x70] sm:$0xff]  }
   0x7   :  { %636 = vmatprep.subr.bf16.mxu0 %v705_v0  ;;  %644 = vmatprep.subr.bf16.mxu1 %v705_v0  ;;  %v704_v28 = vld [vmem:[%s875_s0 + $0x78] sm:$0x3f]   ;;  %v424_v29 = vand.u32 %v703_v26, %v737_v5 }
   0x8   :  { %23 = vperm.xlu0 %688, %v16_v22   ;;  %v487_v30 = vand.u32 %v704_v28, %v737_v5 }
   0x9   :  { %625 = vmatmul.mubr.msk.bf16.vlgmr.msra.gmra.mrb[0].mxu0 %vm37_vm3, %v751_v9  ;;  %633 = vmatmul.mubr.msk.bf16.vlgmr.msra.gmra.mrb[0].mxu1 %vm37_vm3, %v751_v9 }
   0xa   :  { %637 = vmatpush3.bf16.msra.mxu0 %v693_v11  ;;  %645 = vmatpush3.bf16.msra.mxu1 %v694_v12 }
   0xb   :  { %638 = vmatprep.subr.bf16.mxu0 %v705_v0  ;;  %646 = vmatprep.subr.bf16.mxu1 %v705_v0 }
   0xc   :  { %640 = vmatprep.mubr.msk.bf16.mxu0 %vm707_vm2, %v705_v0  ;;  %648 = vmatprep.mubr.msk.bf16.mxu1 %vm707_vm2, %v705_v0 }
   0xe   :  { %639 = vmatpush3.bf16.msra.mxu0 %v172_v16  ;;  %647 = vmatpush3.bf16.msra.mxu1 %v235_v17 }
   0xf   :  { %652 = vmatprep.subr.bf16.mxu0 %v705_v0  ;;  %660 = vmatprep.subr.bf16.mxu1 %v705_v0 }
  0x11   :  { %641 = vmatmul.mubr.msk.bf16.vlgmr.msra.gmra.mrb[4].mxu0 %vm37_vm3, %v751_v9  ;;  %649 = vmatmul.mubr.msk.bf16.vlgmr.msra.gmra.mrb[4].mxu1 %vm37_vm3, %v751_v9 }
  0x12   :  { %653 = vmatpush3.bf16.msra.mxu0 %v697_v18  ;;  %661 = vmatpush3.bf16.msra.mxu1 %v698_v19 }
  0x13   :  { %654 = vmatprep.subr.bf16.mxu0 %v705_v0  ;;  %662 = vmatprep.subr.bf16.mxu1 %v705_v0 }
  0x14   :  { %656 = vmatprep.mubr.msk.bf16.mxu0 %vm707_vm2, %v705_v0  ;;  %664 = vmatprep.mubr.msk.bf16.mxu1 %vm707_vm2, %v705_v0 }
  0x16   :  { %655 = vmatpush3.bf16.msra.mxu0 %v298_v23  ;;  %663 = vmatpush3.bf16.msra.mxu1 %v361_v24 }
  0x17   :  { %668 = vmatprep.subr.bf16.mxu0 %v705_v0  ;;  %676 = vmatprep.subr.bf16.mxu1 %v705_v0 }
  0x19   :  { %657 = vmatmul.mubr.msk.bf16.vlgmr.msra.gmra.mrb[8].mxu0 %vm37_vm3, %v751_v9  ;;  %665 = vmatmul.mubr.msk.bf16.vlgmr.msra.gmra.mrb[8].mxu1 %vm37_vm3, %v751_v9 }
  0x1a   :  { %669 = vmatpush3.bf16.msra.mxu0 %v701_v25  ;;  %677 = vmatpush3.bf16.msra.mxu1 %v702_v27 }
  0x1b   :  { %670 = vmatprep.subr.bf16.mxu0 %v705_v0  ;;  %678 = vmatprep.subr.bf16.mxu1 %v705_v0 }
  0x1c   :  { %672 = vmatprep.mubr.msk.bf16.mxu0 %vm707_vm2, %v705_v0  ;;  %680 = vmatprep.mubr.msk.bf16.mxu1 %vm707_vm2, %v705_v0 }
  0x1e   :  { %671 = vmatpush3.bf16.msra.mxu0 %v424_v29  ;;  %679 = vmatpush3.bf16.msra.mxu1 %v487_v30 }
  0x21   :  { %673 = vmatmul.mubr.msk.bf16.vlgmr.msra.gmra.mrb[12].mxu0 %vm37_vm3, %v751_v9  ;;  %681 = vmatmul.mubr.msk.bf16.vlgmr.msra.gmra.mrb[12].mxu1 %vm37_vm3, %v751_v9 }
  0x87   :  { %v24_v31 = vpop.permute.xlu0 %23 }
  0xdc   :  { %v82_v32 = vpop.f32.mrb[0].mxu0  ;;  %v145_v33 = vpop.f32.mrb[0].mxu1 }
  0xdd   :  { %v83_v34 = vadd.f32 %v82_v32, %v24_v31  ;;  %v626_v35 = vpop.f32.mrb[1].mxu0  ;;  %v146_v36 = vadd.f32 %v145_v33, %v24_v31  ;;  %v634_v37 = vpop.f32.mrb[1].mxu1 }
  0xde   :  { %v85_v38 = vpop.f32.mrb[2].mxu0  ;;  %v148_v40 = vpop.f32.mrb[2].mxu1 }
  0xdf   :  { %v88_v39 = vmax.f32 %v83_v34, 0.0  ;;  %v627_v41 = vpop.f32.mrb[3].mxu0  ;;  %v151_v42 = vmax.f32 %v146_v36, 0.0  ;;  %v635_v43 = vpop.f32.mrb[3].mxu1 }
  0xe1   :  { %v89_v44 = vpack.c.bf16 %v88_v39, %v88_v39  ;;  %v152_v45 = vpack.c.bf16 %v151_v42, %v151_v42 }
  0xe3   :  { %91 = vst.msk [vmem:[%s878_s3] sm:$0xf] %vm90_vm4, %v89_v44  ;;  %547 = vst.msk [vmem:[%s878_s3 + $0x4] sm:$0xf] %vm90_vm4, %v152_v45 }
  0xe4   :  { %v208_v46 = vpop.f32.mrb[4].mxu0  ;;  %v271_v48 = vpop.f32.mrb[4].mxu1 }
  0xe5   :  { %v209_v47 = vadd.f32 %v208_v46, %v24_v31  ;;  %v642_v49 = vpop.f32.mrb[5].mxu0  ;;  %v272_v50 = vadd.f32 %v271_v48, %v24_v31  ;;  %v650_v51 = vpop.f32.mrb[5].mxu1 }
  0xe6   :  { %v211_v52 = vpop.f32.mrb[6].mxu0  ;;  %v274_v54 = vpop.f32.mrb[6].mxu1 }
  0xe7   :  { %v214_v53 = vmax.f32 %v209_v47, 0.0  ;;  %v643_v55 = vpop.f32.mrb[7].mxu0  ;;  %v277_v56 = vmax.f32 %v272_v50, 0.0  ;;  %v651_v57 = vpop.f32.mrb[7].mxu1 }
  0xe9   :  { %v215_v58 = vpack.c.bf16 %v214_v53, %v214_v53  ;;  %v278_v59 = vpack.c.bf16 %v277_v56, %v277_v56 }
  0xeb   :  { %555 = vst.msk [vmem:[%s878_s3 + $0x8] sm:$0xf] %vm90_vm4, %v215_v58  ;;  %563 = vst.msk [vmem:[%s878_s3 + $0xc] sm:$0xf] %vm90_vm4, %v278_v59 }
  0xec   :  { %v334_v60 = vpop.f32.mrb[8].mxu0  ;;  %v397_v62 = vpop.f32.mrb[8].mxu1 }
  0xed   :  { %v335_v61 = vadd.f32 %v334_v60, %v24_v31  ;;  %v658_v63 = vpop.f32.mrb[9].mxu0  ;;  %v398_v0 = vadd.f32 %v397_v62, %v24_v31  ;;  %v666_v1 = vpop.f32.mrb[9].mxu1 }
  0xee   :  { %v337_v2 = vpop.f32.mrb[10].mxu0  ;;  %v400_v4 = vpop.f32.mrb[10].mxu1 }
  0xef   :  { %v340_v3 = vmax.f32 %v335_v61, 0.0  ;;  %v659_v5 = vpop.f32.mrb[11].mxu0  ;;  %v403_v6 = vmax.f32 %v398_v0, 0.0  ;;  %v667_v7 = vpop.f32.mrb[11].mxu1 }
  0xf1   :  { %v341_v8 = vpack.c.bf16 %v340_v3, %v340_v3  ;;  %v404_v9 = vpack.c.bf16 %v403_v6, %v403_v6 }
  0xf3   :  { %571 = vst.msk [vmem:[%s878_s3 + $0x10] sm:$0xf] %vm90_vm4, %v341_v8  ;;  %579 = vst.msk [vmem:[%s878_s3 + $0x14] sm:$0xf] %vm90_vm4, %v404_v9 }
  0xf4   :  { %v460_v10 = vpop.f32.mrb[12].mxu0  ;;  %v523_v12 = vpop.f32.mrb[12].mxu1 }
  0xf5   :  { %v461_v11 = vadd.f32 %v460_v10, %v24_v31  ;;  %v674_v13 = vpop.f32.mrb[13].mxu0  ;;  %v524_v14 = vadd.f32 %v523_v12, %v24_v31  ;;  %v682_v15 = vpop.f32.mrb[13].mxu1 }
  0xf6   :  { %v463_v16 = vpop.f32.mrb[14].mxu0  ;;  %v526_v18 = vpop.f32.mrb[14].mxu1 }
  0xf7   :  { %v466_v17 = vmax.f32 %v461_v11, 0.0  ;;  %v675_v19 = vpop.f32.mrb[15].mxu0  ;;  %v529_v20 = vmax.f32 %v524_v14, 0.0  ;;  %v683_v21 = vpop.f32.mrb[15].mxu1 }
  0xf9   :  { %v467_v22 = vpack.c.bf16 %v466_v17, %v466_v17  ;;  %v530_v23 = vpack.c.bf16 %v529_v20, %v529_v20 }
  0xfb   :  { %587 = vst.msk [vmem:[%s878_s3 + $0x18] sm:$0xf] %vm90_vm4, %v467_v22  ;;  %595 = vst.msk [vmem:[%s878_s3 + $0x1c] sm:$0xf] %vm90_vm4, %v530_v23 }

</bundles_post_ra>
